<compile_context>
chip_gen: v5e
topology: v5e:2x2
jax: 0.10.0
libtpu: 0.0.40
codegen_flags: <defaults>
</compile_context>

<pallas_src>
import functools

import jax
import jax.numpy as jnp
from jax.experimental import pallas as pl
from jax.experimental.pallas import tpu as pltpu

LANE = 128


def _round_up(x: int, m: int) -> int:
    return ((x + m - 1) // m) * m


def mlp_kernel(x_ref, w1_ref, b1_ref, w2_ref, b2_ref, o_ref):
    # Linear 1: bf16 x bf16 -> f32 accumulation on the MXU, f32 bias + ReLU (VPU).
    h = jnp.dot(x_ref[...], w1_ref[...], preferred_element_type=jnp.float32)
    h = jnp.maximum(h + b1_ref[...], 0.0)            # b1 is (1, HID_PAD) -> broadcasts
    # Linear 2: downcast activation to bf16 for the MXU, accumulate in f32,
    # f32 bias + ReLU epilogue, final cast to the (bf16) output dtype on store.
    o = jnp.dot(h.astype(w2_ref.dtype), w2_ref[...],
                preferred_element_type=jnp.float32)
    o_ref[...] = jnp.maximum(o + b2_ref[...], 0.0).astype(o_ref.dtype)


def prepare_params(w1, b1, w2, b2):
    """One-time parameter prep: zero-pad to lane-dense (multiple-of-128) widths
    and cast weights to bf16.  Call once, reuse the result for every forward.

    w1: [IN, HID] (transposed vs. PyTorch's [out, in]); b1: [HID]
    w2: [HID, OUT]; b2: [OUT]
    ReLU(0)=0 and zero weight rows/cols contribute nothing, so padding is a
    mathematical no-op after slicing [:, :OUT].
    """
    IN, HID = w1.shape
    OUT = w2.shape[1]
    HID_PAD = _round_up(max(HID, LANE), LANE)
    OUT_PAD = _round_up(max(OUT, LANE), LANE)

    w1_p = jnp.zeros((IN, HID_PAD), jnp.bfloat16).at[:, :HID].set(
        w1.astype(jnp.bfloat16))
    b1_p = jnp.zeros((1, HID_PAD), jnp.float32).at[0, :HID].set(b1)
    w2_p = jnp.zeros((HID_PAD, OUT_PAD), jnp.bfloat16).at[:HID, :OUT].set(
        w2.astype(jnp.bfloat16))
    b2_p = jnp.zeros((1, OUT_PAD), jnp.float32).at[0, :OUT].set(b2)
    return w1_p, b1_p, w2_p, b2_p


@functools.partial(jax.jit, static_argnames=("out_features", "block_rows"))
def fashion_mnist_model_v1(x_nchw, w1_p, b1_p, w2_p, b2_p, *,
                           out_features, block_rows=1024):
    """Forward pass of FashionMNISTModelV1.

    x_nchw:      [B, C, H, W] float32
    w1_p..b2_p:  outputs of prepare_params (padded, weights in bf16)
    Returns      [B, out_features] float32.
    """
    B = x_nchw.shape[0]
    x2d = x_nchw.reshape(B, -1).astype(jnp.bfloat16)   # nn.Flatten + bf16, fused under jit
    IN = x2d.shape[1]
    HID_PAD = w1_p.shape[1]
    OUT_PAD = w2_p.shape[1]
    assert w1_p.shape[0] == IN

    # Row tile: big enough to amortize per-step overhead, multiple of 16 for
    # bf16 sublane packing, and capped at cdiv(B, 2) so v7x's two TensorCores
    # both get grid steps.  Partial last block is clipped by Pallas.
    if B <= 16:
        bm = B                                          # block == full array dim (always legal)
    else:
        bm = min(block_rows, _round_up(pl.cdiv(B, 2), 16))
    grid = (pl.cdiv(B, bm),)

    out = pl.pallas_call(
        mlp_kernel,
        out_shape=jax.ShapeDtypeStruct((B, OUT_PAD), jnp.bfloat16),
        grid=grid,
        in_specs=[
            pl.BlockSpec((bm, IN), lambda i: (i, 0)),
            pl.BlockSpec((IN, HID_PAD), lambda i: (0, 0)),
            pl.BlockSpec((1, HID_PAD), lambda i: (0, 0)),
            pl.BlockSpec((HID_PAD, OUT_PAD), lambda i: (0, 0)),
            pl.BlockSpec((1, OUT_PAD), lambda i: (0, 0)),
        ],
        out_specs=pl.BlockSpec((bm, OUT_PAD), lambda i: (i, 0)),
        compiler_params=pltpu.CompilerParams(
            dimension_semantics=("parallel",)),
    )(x2d, w1_p, b1_p, w2_p, b2_p)

    return out[:, :out_features].astype(jnp.float32)


def _torch_linear_init(key, fan_in, fan_out):
    """Deterministic init mimicking nn.Linear: U(-1/sqrt(fan_in), 1/sqrt(fan_in)).
    Returns weight already transposed to [fan_in, fan_out]."""
    kw, kb = jax.random.split(key)
    bound = 1.0 / jnp.sqrt(jnp.float32(fan_in))
    w = jax.random.uniform(kw, (fan_in, fan_out), jnp.float32, -bound, bound)
    b = jax.random.uniform(kb, (fan_out,), jnp.float32, -bound, bound)
    return w, b


if __name__ == "__main__":
    # FashionMNIST-like shapes: NCHW [B, 1, 28, 28] -> flatten to 784 features.
    B, C, H, W = 8, 1, 28, 28
    INPUT_SHAPE = C * H * W      # 784
    HIDDEN_UNITS = 32
    OUTPUT_SHAPE = 10

    key = jax.random.PRNGKey(0)
    kx, k1, k2 = jax.random.split(key, 3)

    x = jax.random.normal(kx, (B, C, H, W), jnp.float32)
    w1, b1 = _torch_linear_init(k1, INPUT_SHAPE, HIDDEN_UNITS)
    w2, b2 = _torch_linear_init(k2, HIDDEN_UNITS, OUTPUT_SHAPE)

    # One-time weight prep (pad + bf16 cast), reused across calls.
    params = prepare_params(w1, b1, w2, b2)

    out = fashion_mnist_model_v1(x, *params, out_features=OUTPUT_SHAPE)
    out = jax.block_until_ready(out)

    # Pure-JAX f32 reference of the original module's forward pass.
    x2d = x.reshape(B, -1)
    ref = jnp.maximum(jnp.maximum(x2d @ w1 + b1, 0.0) @ w2 + b2, 0.0)
    assert out.shape == (B, OUTPUT_SHAPE)
    # bf16 operands + bf16 output store (f32 accumulation) -> loosened tolerance.
    assert jnp.allclose(out, ref, atol=3e-2, rtol=3e-2), \
        f"max abs err {jnp.max(jnp.abs(out - ref))}"

    print("KERNEL_OK")
</pallas_src>

<mosaic_0001>
module attributes {stable_mosaic.version = 11 : i64} {
  func.func @mlp_kernel(%arg0: i32, %arg1: memref<8x784xbf16, #tpu.memory_space<vmem>>, %arg2: memref<784x128xbf16, #tpu.memory_space<vmem>>, %arg3: memref<1x128xf32, #tpu.memory_space<vmem>>, %arg4: memref<128x128xbf16, #tpu.memory_space<vmem>>, %arg5: memref<1x128xf32, #tpu.memory_space<vmem>>, %arg6: memref<8x128xbf16, #tpu.memory_space<vmem>>) attributes {dimension_semantics = [#tpu.dimension_semantics<parallel>], iteration_bounds = array<i64: 1>, scalar_prefetch = 0 : i64, scratch_operands = 0 : i64, tpu.core_type = #tpu.core_type<tc>, window_params = [{transform_indices = @transform_0, window_bounds = array<i64: 8, 784>}, {pipeline_mode = #tpu.pipeline_mode<synchronous>, transform_indices = @transform_1, window_bounds = array<i64: 784, 128>}, {pipeline_mode = #tpu.pipeline_mode<synchronous>, transform_indices = @transform_2, window_bounds = array<i64: 1, 128>}, {pipeline_mode = #tpu.pipeline_mode<synchronous>, transform_indices = @transform_3, window_bounds = array<i64: 128, 128>}, {pipeline_mode = #tpu.pipeline_mode<synchronous>, transform_indices = @transform_4, window_bounds = array<i64: 1, 128>}, {transform_indices = @transform_5, window_bounds = array<i64: 8, 128>}]} {
    %c0 = arith.constant 0 : index
    %c0_0 = arith.constant 0 : index
    %0 = vector.load %arg1[%c0, %c0_0] : memref<8x784xbf16, #tpu.memory_space<vmem>>, vector<8x784xbf16>
    %c0_1 = arith.constant 0 : index
    %c0_2 = arith.constant 0 : index
    %1 = vector.load %arg2[%c0_1, %c0_2] : memref<784x128xbf16, #tpu.memory_space<vmem>>, vector<784x128xbf16>
    %cst = arith.constant dense<0.000000e+00> : vector<8x128xf32>
    %2 = tpu.matmul %0, %1, %cst {dimension_numbers = #tpu.dot_dimension_numbers<[1], [0], [0], [1], [0, 0, 1, 1], [], []>} : vector<8x784xbf16>, vector<784x128xbf16>, vector<8x128xf32> -> vector<8x128xf32>
    %c0_3 = arith.constant 0 : index
    %c0_4 = arith.constant 0 : index
    %3 = vector.load %arg3[%c0_3, %c0_4] : memref<1x128xf32, #tpu.memory_space<vmem>>, vector<1x128xf32>
    %4 = vector.broadcast %3 : vector<1x128xf32> to vector<8x128xf32>
    %5 = arith.addf %2, %4 : vector<8x128xf32>
    %cst_5 = arith.constant 0.000000e+00 : f32
    %6 = vector.broadcast %cst_5 : f32 to vector<8x128xf32>
    %7 = arith.maximumf %5, %6 : vector<8x128xf32>
    %8 = arith.truncf %7 : vector<8x128xf32> to vector<8x128xbf16>
    %c0_6 = arith.constant 0 : index
    %c0_7 = arith.constant 0 : index
    %9 = vector.load %arg4[%c0_6, %c0_7] : memref<128x128xbf16, #tpu.memory_space<vmem>>, vector<128x128xbf16>
    %cst_8 = arith.constant dense<0.000000e+00> : vector<8x128xf32>
    %10 = tpu.matmul %8, %9, %cst_8 {dimension_numbers = #tpu.dot_dimension_numbers<[1], [0], [0], [1], [0, 0, 1, 1], [], []>} : vector<8x128xbf16>, vector<128x128xbf16>, vector<8x128xf32> -> vector<8x128xf32>
    %c0_9 = arith.constant 0 : index
    %c0_10 = arith.constant 0 : index
    %11 = vector.load %arg5[%c0_9, %c0_10] : memref<1x128xf32, #tpu.memory_space<vmem>>, vector<1x128xf32>
    %12 = vector.broadcast %11 : vector<1x128xf32> to vector<8x128xf32>
    %13 = arith.addf %10, %12 : vector<8x128xf32>
    %cst_11 = arith.constant 0.000000e+00 : f32
    %14 = vector.broadcast %cst_11 : f32 to vector<8x128xf32>
    %15 = arith.maximumf %13, %14 : vector<8x128xf32>
    %16 = arith.truncf %15 : vector<8x128xf32> to vector<8x128xbf16>
    %c0_12 = arith.constant 0 : index
    %c0_13 = arith.constant 0 : index
    %17 = vector.load %arg6[%c0_12, %c0_13] : memref<8x128xbf16, #tpu.memory_space<vmem>>, vector<8x128xbf16>
    tpu.vector_store %arg6[%c0_12, %c0_13], %16 {strides = array<i32>} : memref<8x128xbf16, #tpu.memory_space<vmem>>, vector<8x128xbf16>,
    return
  }
  func.func @transform_0(%arg0: i32) -> (i32, i32) {
    %c0_i32 = arith.constant 0 : i32
    %c0_i32_0 = arith.constant 0 : i32
    return %arg0, %c0_i32 : i32, i32
  }
  func.func @transform_1(%arg0: i32) -> (i32, i32) {
    %c0_i32 = arith.constant 0 : i32
    %c0_i32_0 = arith.constant 0 : i32
    %c0_i32_1 = arith.constant 0 : i32
    return %c0_i32, %c0_i32_0 : i32, i32
  }
  func.func @transform_2(%arg0: i32) -> (i32, i32) {
    %c0_i32 = arith.constant 0 : i32
    %c0_i32_0 = arith.constant 0 : i32
    %c0_i32_1 = arith.constant 0 : i32
    return %c0_i32, %c0_i32_0 : i32, i32
  }
  func.func @transform_3(%arg0: i32) -> (i32, i32) {
    %c0_i32 = arith.constant 0 : i32
    %c0_i32_0 = arith.constant 0 : i32
    %c0_i32_1 = arith.constant 0 : i32
    return %c0_i32, %c0_i32_0 : i32, i32
  }
  func.func @transform_4(%arg0: i32) -> (i32, i32) {
    %c0_i32 = arith.constant 0 : i32
    %c0_i32_0 = arith.constant 0 : i32
    %c0_i32_1 = arith.constant 0 : i32
    return %c0_i32, %c0_i32_0 : i32, i32
  }
  func.func @transform_5(%arg0: i32) -> (i32, i32) {
    %c0_i32 = arith.constant 0 : i32
    %c0_i32_0 = arith.constant 0 : i32
    return %arg0, %c0_i32 : i32, i32
  }
}

</mosaic_0001>

<bundles_post_ra>
// kernel: fashion_mnist_model_v1.1
= control target key start
LH: loop header
LB: loop body
LE: loop exit
PB: predicated region body
PF: predicated region fallthrough
CT: control target
= control target key end

     0   :  { %vm445_vm0 = vcmask 130048   ;;  %s1140_s1 = inlined_call_operand.vmem [shape: bf16[784,128], index: 1, kind: input, shape index: {}]   ;;  %s1141_s2 = inlined_call_operand.vmem [shape: f32[1,128], index: 2, kind: input, shape index: {}]   ;;  %s1142_s0 = inlined_call_operand.vmem [shape: bf16[8,784], index: 0, kind: input, shape index: {}]   ;;  %s1143_s4 = inlined_call_operand.vmem [shape: f32[1,128], index: 4, kind: input, shape index: {}]   ;;  %s1144_s3 = inlined_call_operand.vmem [shape: bf16[128,128], index: 3, kind: input, shape index: {}]   ;;  %s1145_s5 = inlined_call_operand.vmem [shape: bf16[8,128], index: 5, kind: output, shape index: {}]  }
   0x1   :  { %v866_v0 = vld [vmem:[%s1140_s1 + $0x38] sm:$0xff]  ;;  %v865_v3 = vld [vmem:[%s1140_s1 + $0x30] sm:$0xff]  ;;  %v864_v8 = vld [vmem:[%s1140_s1 + $0x28] sm:$0xff] }
   0x2   :  { %v874_v1 = vld [vmem:[%s1140_s1 + $0x78] sm:$0xff]  ;;  %449 = vmatpush.bf16.msra.mxu0 %v866_v0  ;;  %v873_v4 = vld [vmem:[%s1140_s1 + $0x70] sm:$0xff]  ;;  %v872_v9 = vld [vmem:[%s1140_s1 + $0x68] sm:$0xff] }
   0x3   :  { %v882_v2 = vld [vmem:[%s1140_s1 + $0xb8] sm:$0xff]  ;;  %462 = vmatpush.bf16.msra.mxu1 %v874_v1  ;;  %v881_v5 = vld [vmem:[%s1140_s1 + $0xb0] sm:$0xff]  ;;  %v880_v10 = vld [vmem:[%s1140_s1 + $0xa8] sm:$0xff] }
   0x4   :  { %475 = vmatpush.bf16.msra.mxu2 %v882_v2  ;;  %v890_v6 = vld [vmem:[%s1140_s1 + $0xf8] sm:$0xff]  ;;  %v889_v7 = vld [vmem:[%s1140_s1 + $0xf0] sm:$0xff]  ;;  %v888_v11 = vld [vmem:[%s1140_s1 + $0xe8] sm:$0xff] }
   0x5   :  { %488 = vmatpush.bf16.msra.mxu3 %v890_v6  ;;  %v863_v12 = vld [vmem:[%s1140_s1 + $0x20] sm:$0xff]  ;;  %v862_v16 = vld [vmem:[%s1140_s1 + $0x18] sm:$0xff]  ;;  %v861_v20 = vld [vmem:[%s1140_s1 + $0x10] sm:$0xff] }
   0x6   :  { %450 = vmatpush.bf16.msra.mxu0 %v865_v3  ;;  %v871_v13 = vld [vmem:[%s1140_s1 + $0x60] sm:$0xff]  ;;  %v870_v17 = vld [vmem:[%s1140_s1 + $0x58] sm:$0xff]  ;;  %v869_v21 = vld [vmem:[%s1140_s1 + $0x50] sm:$0xff] }
   0x7   :  { %463 = vmatpush.bf16.msra.mxu1 %v873_v4  ;;  %v879_v14 = vld [vmem:[%s1140_s1 + $0xa0] sm:$0xff]  ;;  %v878_v18 = vld [vmem:[%s1140_s1 + $0x98] sm:$0xff]  ;;  %v877_v22 = vld [vmem:[%s1140_s1 + $0x90] sm:$0xff] }
   0x8   :  { %476 = vmatpush.bf16.msra.mxu2 %v881_v5  ;;  %v887_v15 = vld [vmem:[%s1140_s1 + $0xe0] sm:$0xff]  ;;  %v886_v19 = vld [vmem:[%s1140_s1 + $0xd8] sm:$0xff]  ;;  %v885_v23 = vld [vmem:[%s1140_s1 + $0xd0] sm:$0xff] }
   0x9   :  { %489 = vmatpush.bf16.msra.mxu3 %v889_v7  ;;  %v860_v24 = vld [vmem:[%s1140_s1 + $0x8] sm:$0xff]  ;;  %v21_v26 = vld [vmem:[%s1142_s0] sm:$0xff]  ;;  %v898_v34 = vld [vmem:[%s1140_s1 + $0x138] sm:$0xff] }
   0xa   :  { %451 = vmatpush.bf16.msra.mxu0 %v864_v8  ;;  %v868_v25 = vld [vmem:[%s1140_s1 + $0x48] sm:$0xff]  ;;  %v131_v29 = vunpack.c.l.b16 %v21_v26  ;;  %v132_v31 = vunpack.c.h.b16 %v21_v26  ;;  %v859_v32 = vld [vmem:[%s1140_s1] sm:$0xff]  ;;  %v906_v35 = vld [vmem:[%s1140_s1 + $0x178] sm:$0xff] }
   0xb   :  { %464 = vmatpush.bf16.msra.mxu1 %v872_v9  ;;  %v876_v27 = vld [vmem:[%s1140_s1 + $0x88] sm:$0xff]  ;;  %v867_v33 = vld [vmem:[%s1140_s1 + $0x40] sm:$0xff]  ;;  %v897_v43 = vld [vmem:[%s1140_s1 + $0x130] sm:$0xff] }
   0xc   :  { %477 = vmatpush.bf16.msra.mxu2 %v880_v10  ;;  %v22_v28 = vld [vmem:[%s1142_s0 + $0x8] sm:$0xff]  ;;  %v875_v36 = vld [vmem:[%s1140_s1 + $0x80] sm:$0xff]  ;;  %v138_v38 = vpack.c.b16 %v131_v29, %v131_v29  ;;  %v139_v39 = vpack.c.b16 %v132_v31, %v132_v31  ;;  %v905_v44 = vld [vmem:[%s1140_s1 + $0x170] sm:$0xff] }
   0xd   :  { %490 = vmatpush.bf16.msra.mxu3 %v888_v11  ;;  %v884_v30 = vld [vmem:[%s1140_s1 + $0xc8] sm:$0xff]  ;;  %v133_v37 = vunpack.c.l.b16 %v22_v28  ;;  %v134_v40 = vunpack.c.h.b16 %v22_v28  ;;  %v883_v41 = vld [vmem:[%s1140_s1 + $0xc0] sm:$0xff]  ;;  %v24_v51 = vld [vmem:[%s1142_s0 + $0x18] sm:$0xf] }
   0xe   :  { %452 = vmatpush.bf16.msra.mxu0 %v863_v12  ;;  %v907_v42 = vld [vmem:[%s1140_s1 + $0x180] sm:$0xff]  ;;  %v896_v47 = vld [vmem:[%s1140_s1 + $0x128] sm:$0xff]  ;;  %v894_v52 = vld [vmem:[%s1140_s1 + $0x118] sm:$0xff]  ;;  %v137_v54 = vunpack.c.l.b16 %v24_v51 }
   0xf   :  { %465 = vmatpush.bf16.msra.mxu1 %v871_v13  ;;  %v140_v45 = vpack.c.b16 %v133_v37, %v133_v37  ;;  %v141_v46 = vpack.c.b16 %v134_v40, %v134_v40  ;;  %v904_v48 = vld [vmem:[%s1140_s1 + $0x168] sm:$0xff]  ;;  %v895_v49 = vld [vmem:[%s1140_s1 + $0x120] sm:$0xff]  ;;  %v902_v53 = vld [vmem:[%s1140_s1 + $0x158] sm:$0xff] }
  0x10   :  { %478 = vmatpush.bf16.msra.mxu2 %v879_v14  ;;  %v903_v50 = vld [vmem:[%s1140_s1 + $0x160] sm:$0xff]  ;;  %v893_v55 = vld [vmem:[%s1140_s1 + $0x110] sm:$0xff]  ;;  %v144_v57 = vpack.c.b16 %v137_v54, %v137_v54  ;;  %v892_v58 = vld [vmem:[%s1140_s1 + $0x108] sm:$0xff] }
  0x11   :  { %491 = vmatpush.bf16.msra.mxu3 %v887_v15  ;;  %v901_v56 = vld [vmem:[%s1140_s1 + $0x150] sm:$0xff]  ;;  %v900_v59 = vld [vmem:[%s1140_s1 + $0x148] sm:$0xff]  ;;  %v891_v63 = vld [vmem:[%s1140_s1 + $0x100] sm:$0xff] }
  0x12   :  { %453 = vmatpush.bf16.msra.mxu0 %v862_v16  ;;  %v23_v60 = vld [vmem:[%s1142_s0 + $0x10] sm:$0xff]  ;;  %v899_v0 = vld [vmem:[%s1140_s1 + $0x140] sm:$0xff]  ;;  %v915_v3 = vld [vmem:[%s1144_s3 + $0x38] sm:$0xff] }
  0x13   :  { %466 = vmatpush.bf16.msra.mxu1 %v870_v17  ;;  %v135_v61 = vunpack.c.l.b16 %v23_v60  ;;  %v136_v62 = vunpack.c.h.b16 %v23_v60  ;;  %v914_v4 = vld [vmem:[%s1144_s3 + $0x30] sm:$0xff]  ;;  %v913_v5 = vld [vmem:[%s1144_s3 + $0x28] sm:$0xff]  ;;  %v912_v6 = vld [vmem:[%s1144_s3 + $0x20] sm:$0xff] }
  0x14   :  { %479 = vmatpush.bf16.msra.mxu2 %v878_v18  ;;  %v911_v7 = vld [vmem:[%s1144_s3 + $0x18] sm:$0xff]  ;;  %v910_v8 = vld [vmem:[%s1144_s3 + $0x10] sm:$0xff]  ;;  %v909_v9 = vld [vmem:[%s1144_s3 + $0x8] sm:$0xff] }
  0x15   :  { %492 = vmatpush.bf16.msra.mxu3 %v886_v19  ;;  %v142_v1 = vpack.c.b16 %v135_v61, %v135_v61  ;;  %v143_v2 = vpack.c.b16 %v136_v62, %v136_v62  ;;  %v908_v12 = vld [vmem:[%s1144_s3] sm:$0xff] }
  0x16   :  { %454 = vmatpush.bf16.msra.mxu0 %v861_v20  ;;  %v916_v17 = vld [vmem:[%s1141_s2] ss:$0 sm:$0xff] }
  0x17   :  { %467 = vmatpush.bf16.msra.mxu1 %v869_v21 }
  0x18   :  { %480 = vmatpush.bf16.msra.mxu2 %v877_v22 }
  0x19   :  { %493 = vmatpush.bf16.msra.mxu3 %v885_v23 }
  0x1a   :  { %455 = vmatpush.bf16.msra.mxu0 %v860_v24 }
  0x1b   :  { %468 = vmatpush.bf16.msra.mxu1 %v868_v25 }
  0x1c   :  { %481 = vmatpush.bf16.msra.mxu2 %v876_v27 }
  0x1d   :  { %494 = vmatpush.bf16.msra.mxu3 %v884_v30 }
  0x1e   :  { %456 = vmatpush.bf16.msra.mxu0 %v859_v32 }
  0x1f   :  { %469 = vmatpush.bf16.msra.mxu1 %v867_v33 }
  0x20   :  { %482 = vmatpush.bf16.msra.mxu2 %v875_v36 }
  0x21   :  { %457 = vmatmul.bf16.vlgmr.msra.gmra.mxu0 %v138_v38  ;;  %495 = vmatpush.bf16.msra.mxu3 %v883_v41 }
  0x22   :  { %501 = vmatpush.bf16.msrb.mxu0 %v898_v34  ;;  %470 = vmatmul.bf16.vlgmr.msra.gmra.mxu1 %v139_v39 }
  0x23   :  { %514 = vmatpush.bf16.msrb.mxu1 %v906_v35  ;;  %483 = vmatmul.bf16.vlgmr.msra.gmra.mxu2 %v140_v45  ;;  %v917_v35 = vld [vmem:[%s1143_s4] ss:$0 sm:$0xff] }
  0x24   :  { %534 = vmatpush.bf16.msrb.mxu2 %v907_v42  ;;  %496 = vmatmul.bf16.vlgmr.msra.gmra.mxu3 %v141_v46 }
  0x25   :  { %610 = vmatpush.bf16.msrb.mxu3 %v915_v3 }
  0x26   :  { %502 = vmatpush.bf16.msrb.mxu0 %v897_v43 }
  0x27   :  { %515 = vmatpush.bf16.msrb.mxu1 %v905_v44 }
  0x29   :  { %611 = vmatpush.bf16.msrb.mxu3 %v914_v4 }
  0x2a   :  { %503 = vmatpush.bf16.msrb.mxu0 %v896_v47 }
  0x2b   :  { %516 = vmatpush.bf16.msrb.mxu1 %v904_v48 }
  0x2d   :  { %612 = vmatpush.bf16.msrb.mxu3 %v913_v5 }
  0x2e   :  { %504 = vmatpush.bf16.msrb.mxu0 %v895_v49 }
  0x2f   :  { %517 = vmatpush.bf16.msrb.mxu1 %v903_v50 }
  0x31   :  { %613 = vmatpush.bf16.msrb.mxu3 %v912_v6 }
  0x32   :  { %505 = vmatpush.bf16.msrb.mxu0 %v894_v52 }
  0x33   :  { %518 = vmatpush.bf16.msrb.mxu1 %v902_v53  ;;  %826 = vmatmul.msk.bf16.vlgmr.msrb.gmra.mxu2 %vm445_vm0, %v144_v57 }
  0x35   :  { %614 = vmatpush.bf16.msrb.mxu3 %v911_v7 }
  0x36   :  { %506 = vmatpush.bf16.msrb.mxu0 %v893_v55 }
  0x37   :  { %519 = vmatpush.bf16.msrb.mxu1 %v901_v56 }
  0x39   :  { %615 = vmatpush.bf16.msrb.mxu3 %v910_v8 }
  0x3a   :  { %507 = vmatpush.bf16.msrb.mxu0 %v892_v58 }
  0x3b   :  { %520 = vmatpush.bf16.msrb.mxu1 %v900_v59 }
  0x3d   :  { %616 = vmatpush.bf16.msrb.mxu3 %v909_v9 }
  0x3e   :  { %508 = vmatpush.bf16.msrb.mxu0 %v891_v63 }
  0x3f   :  { %521 = vmatpush.bf16.msrb.mxu1 %v899_v0 }
  0x41   :  { %509 = vmatmul.bf16.vlgmr.msrb.gmra.mxu0 %v142_v1  ;;  %617 = vmatpush.bf16.msrb.mxu3 %v908_v12 }
  0x42   :  { %522 = vmatmul.bf16.vlgmr.msrb.gmra.mxu1 %v143_v2 }
  0x9e   :  { %v458_v10 = vpop.f32.mrf.mxu0 }
  0x9f   :  { %v471_v11 = vpop.f32.mrf.mxu1  ;;  %v459_v18 = vadd.f32 %v916_v17, %v458_v10 }
  0xa1   :  { %v472_v21 = vadd.f32 %v471_v11, %v459_v18 }
  0xa6   :  { %v460_v13 = vpop.f32.mrf.mxu0  ;;  %v484_v15 = vpop.f32.mrf.mxu2 }
  0xa7   :  { %v473_v14 = vpop.f32.mrf.mxu1  ;;  %v497_v16 = vpop.f32.mrf.mxu3  ;;  %v485_v22 = vadd.f32 %v484_v15, %v472_v21 }
  0xa9   :  { %v498_v24 = vadd.f32 %v497_v16, %v485_v22 }
  0xae   :  { %v486_v19 = vpop.f32.mrf.mxu2 }
  0xaf   :  { %v499_v20 = vpop.f32.mrf.mxu3 }
  0xb6   :  { %v536_v23 = vpop.f32.mrf.mxu2 }
  0xbe   :  { %v510_v25 = vpop.f32.mrf.mxu0  ;;  %v538_v29 = vpop.f32.mrf.mxu2 }
  0xbf   :  { %v523_v26 = vpop.f32.mrf.mxu1  ;;  %v511_v27 = vadd.f32 %v510_v25, %v498_v24 }
  0xc1   :  { %v524_v28 = vadd.f32 %v523_v26, %v511_v27 }
  0xc3   :  { %v537_v30 = vadd.f32 %v536_v23, %v524_v28 }
  0xc5   :  { %v540_v31 = vmax.f32 %v537_v30, 0.0 }
  0xc6   :  { %v512_v32 = vpop.f32.mrf.mxu0 }
  0xc7   :  { %v525_v33 = vpop.f32.mrf.mxu1  ;;  %v541_v34 = vpack.c.bf16 %v540_v31, %v540_v31 }
  0xc9   :  { %618 = vmatmul.bf16.vlgmr.msrb.gmra.mxu3 %v541_v34 }
 0x14c   :  { %v619_v36 = vpop.f32.mrf.mxu3 }
 0x14d   :  { %v620_v37 = vadd.f32 %v917_v35, %v619_v36 }
 0x14f   :  { %v623_v38 = vmax.f32 %v620_v37, 0.0 }
 0x151   :  { %v624_v39 = vpack.c.bf16 %v623_v38, %v623_v38 }
 0x153   :  { %625 = vst [vmem:[%s1145_s5] sm:$0xf] %v624_v39 }
 0x154   :  { %v621_v40 = vpop.f32.mrf.mxu3 }

</bundles_post_ra>
